<compile_context>
chip_gen: v6e
topology: v6e:2x2x1
jax: 0.10.0
libtpu: 0.0.40
codegen_flags: <defaults>
</compile_context>

<pallas_src>
import jax
import jax.numpy as jnp
from jax.experimental import pallas as pl
from jax.experimental.pallas import tpu as pltpu


def _filter_kernel(lat_ref, bias_ref, eps_ref, out_ref):
    # lat_ref:  (TB, D)     latent space tile
    # bias_ref: (N, D)      selection_bias (log-variance); same block every step
    # eps_ref:  (TB, N, D)  standard-normal noise, native torch.randn layout
    # out_ref:  (TB, N, D)  stacked per-decoder outputs
    std = jnp.exp(0.5 * bias_ref[...])                       # (N, D)  -> EUP exp
    out_ref[...] = lat_ref[...][:, None, :] + std[None, :, :] * eps_ref[...]


def filter_forward_stacked(lat_space, selection_bias, eps, *, batch_tile=512):
    """Fused filter forward.

    lat_space: (B, D) f32; selection_bias: (N, D) f32; eps: (B, N, D) f32.
    Returns the stacked (B, N, D) array (out[:, i, :] == module output i).
    """
    B, D = lat_space.shape
    N, D2 = selection_bias.shape
    assert D == D2 and eps.shape == (B, N, D)

    # Batch tile: big enough to amortize the ~0.35 us/step overhead at scale,
    # small enough that (lat + eps + out) * double-buffering fits comfortably in
    # the 32 MiB scoped VMEM default on every generation (incl. v7x's 64 MiB).
    TB = min(B, batch_tile)
    grid = (pl.cdiv(B, TB),)

    return pl.pallas_call(
        _filter_kernel,
        out_shape=jax.ShapeDtypeStruct((B, N, D), lat_space.dtype),
        grid_spec=pltpu.PrefetchScalarGridSpec(
            num_scalar_prefetch=0,
            grid=grid,
            in_specs=[
                pl.BlockSpec((TB, D), lambda i: (i, 0)),       # lat tile
                pl.BlockSpec((N, D), lambda i: (0, 0)),        # bias, resident
                pl.BlockSpec((TB, N, D), lambda i: (i, 0, 0)),  # eps tile
            ],
            out_specs=pl.BlockSpec((TB, N, D), lambda i: (i, 0, 0)),
        ),
        compiler_params=pltpu.CompilerParams(
            dimension_semantics=("parallel",),   # megacore: split batch grid
        ),
    )(lat_space, selection_bias, eps)


def filter_forward(lat_space, selection_bias, eps):
    """Matches the PyTorch module's return type: list of N arrays of (B, D)."""
    out = filter_forward_stacked(lat_space, selection_bias, eps)
    N = selection_bias.shape[0]
    return [out[:, i, :] for i in range(N)]


if __name__ == "__main__":
    # Deterministic parameter init (matches the module's __init__)
    filt_initial_log_var = -10.0
    enc_dim_lat_space = 5       # D
    filt_num_decoders = 3       # N
    B = 2                       # batch

    selection_bias = jnp.full(
        (filt_num_decoders, enc_dim_lat_space),
        filt_initial_log_var,
        dtype=jnp.float32,
    )

    key = jax.random.PRNGKey(0)
    k_lat, k_eps = jax.random.split(key)
    lat_space = jax.random.normal(k_lat, (B, enc_dim_lat_space), dtype=jnp.float32)
    # eps plays the role of torch.randn(B, *std.shape) -- generated here so the
    # kernel is deterministic and bit-checkable against a pure-JAX reference.
    # TODO(synk): at training scale, fuse the noise draw into the kernel with
    # pltpu.prng_seed + pltpu.stateful_normal to cut ~1/3 of HBM traffic (the
    # RNG stream would then only match in distribution, not bit-for-bit).
    eps = jax.random.normal(
        k_eps, (B, filt_num_decoders, enc_dim_lat_space), dtype=jnp.float32
    )

    outs = filter_forward(lat_space, selection_bias, eps)
    outs = jax.block_until_ready(outs)

    # Pure-JAX reference of the torch forward
    std = jnp.exp(0.5 * selection_bias)
    ref = [lat_space + std[i, :] * eps[:, i, :] for i in range(filt_num_decoders)]
    for o, r in zip(outs, ref):
        assert o.shape == (B, enc_dim_lat_space)
        assert jnp.allclose(o, r, atol=1e-6), "mismatch vs reference"

    print("KERNEL_OK")
</pallas_src>

<mosaic_0001>
module attributes {stable_mosaic.version = 11 : i64} {
  func.func @_filter_kernel(%arg0: i32, %arg1: memref<2x5xf32, #tpu.memory_space<vmem>>, %arg2: memref<3x5xf32, #tpu.memory_space<vmem>>, %arg3: memref<2x3x5xf32, #tpu.memory_space<vmem>>, %arg4: memref<2x3x5xf32, #tpu.memory_space<vmem>>) attributes {dimension_semantics = [#tpu.dimension_semantics<parallel>], iteration_bounds = array<i64: 1>, scalar_prefetch = 0 : i64, scratch_operands = 0 : i64, tpu.core_type = #tpu.core_type<tc>, window_params = [{transform_indices = @transform_0, window_bounds = array<i64: 2, 5>}, {pipeline_mode = #tpu.pipeline_mode<synchronous>, transform_indices = @transform_1, window_bounds = array<i64: 3, 5>}, {transform_indices = @transform_2, window_bounds = array<i64: 2, 3, 5>}, {transform_indices = @transform_3, window_bounds = array<i64: 2, 3, 5>}]} {
    %c0 = arith.constant 0 : index
    %c0_0 = arith.constant 0 : index
    %0 = vector.load %arg2[%c0, %c0_0] : memref<3x5xf32, #tpu.memory_space<vmem>>, vector<3x5xf32>
    %cst = arith.constant 5.000000e-01 : f32
    %1 = vector.broadcast %cst : f32 to vector<3x5xf32>
    %2 = arith.mulf %1, %0 : vector<3x5xf32>
    %3 = math.exp %2 : vector<3x5xf32>
    %c0_1 = arith.constant 0 : index
    %c0_2 = arith.constant 0 : index
    %4 = vector.load %arg1[%c0_1, %c0_2] : memref<2x5xf32, #tpu.memory_space<vmem>>, vector<2x5xf32>
    %5 = vector.shape_cast %4 : vector<2x5xf32> to vector<2x1x5xf32>
    %6 = vector.shape_cast %3 : vector<3x5xf32> to vector<1x3x5xf32>
    %c0_3 = arith.constant 0 : index
    %c0_4 = arith.constant 0 : index
    %c0_5 = arith.constant 0 : index
    %7 = vector.load %arg3[%c0_3, %c0_4, %c0_5] : memref<2x3x5xf32, #tpu.memory_space<vmem>>, vector<2x3x5xf32>
    %8 = vector.broadcast %6 : vector<1x3x5xf32> to vector<2x3x5xf32>
    %9 = arith.mulf %8, %7 : vector<2x3x5xf32>
    %10 = vector.broadcast %5 : vector<2x1x5xf32> to vector<2x3x5xf32>
    %11 = arith.addf %10, %9 : vector<2x3x5xf32>
    %c0_6 = arith.constant 0 : index
    %c0_7 = arith.constant 0 : index
    %c0_8 = arith.constant 0 : index
    %12 = vector.load %arg4[%c0_6, %c0_7, %c0_8] : memref<2x3x5xf32, #tpu.memory_space<vmem>>, vector<2x3x5xf32>
    tpu.vector_store %arg4[%c0_6, %c0_7, %c0_8], %11 {strides = array<i32>} : memref<2x3x5xf32, #tpu.memory_space<vmem>>, vector<2x3x5xf32>,
    return
  }
  func.func @transform_0(%arg0: i32) -> (i32, i32) {
    %c0_i32 = arith.constant 0 : i32
    %c0_i32_0 = arith.constant 0 : i32
    return %arg0, %c0_i32 : i32, i32
  }
  func.func @transform_1(%arg0: i32) -> (i32, i32) {
    %c0_i32 = arith.constant 0 : i32
    %c0_i32_0 = arith.constant 0 : i32
    %c0_i32_1 = arith.constant 0 : i32
    return %c0_i32, %c0_i32_0 : i32, i32
  }
  func.func @transform_2(%arg0: i32) -> (i32, i32, i32) {
    %c0_i32 = arith.constant 0 : i32
    %c0_i32_0 = arith.constant 0 : i32
    %c0_i32_1 = arith.constant 0 : i32
    return %arg0, %c0_i32, %c0_i32_0 : i32, i32, i32
  }
  func.func @transform_3(%arg0: i32) -> (i32, i32, i32) {
    %c0_i32 = arith.constant 0 : i32
    %c0_i32_0 = arith.constant 0 : i32
    %c0_i32_1 = arith.constant 0 : i32
    return %arg0, %c0_i32, %c0_i32_0 : i32, i32, i32
  }
}

</mosaic_0001>

<bundles_post_ra>
// kernel: tpu_custom_call.1
= control target key start
LH: loop header
LB: loop body
LE: loop exit
PB: predicated region body
PF: predicated region fallthrough
CT: control target
= control target key end

     0   :  { %v69_v2 = vmov 1966171168   ;;  %v31_v4 = vlaneseq  ;;  %vm58_vm0 = vcmask 34816   ;;  %s108_s1 = inlined_call_operand.vmem [shape: f32[3,5], index: 1, kind: input, shape index: {}]   ;;  %s109_s0 = inlined_call_operand.vmem [shape: f32[2,5], index: 0, kind: input, shape index: {}]   ;;  %s110_s2 = inlined_call_operand.vmem [shape: f32[2,3,5], index: 2, kind: input, shape index: {}]   ;;  %s111_s3 = inlined_call_operand.vmem [shape: f32[2,3,5], index: 3, kind: output, shape index: {}]  }
   0x1   :  { %v14_v0 = vld [vmem:[%s108_s1] sm:$0x7]  ;;  %v29_v3 = vunpack.c.l.s4 %v69_v2  ;;  %v43_v15 = vld [vmem:[%s110_s2 + $0x4] sm:$0x7] }
   0x2   :  { %v15_v1 = vmul.f32 0.5, %v14_v0  ;;  %v32_v7 = vshrl.u32 %v31_v4, 7  ;;  %v65_v8 = vld.sshfl [vmem:[%s109_s0] sm:$0x11 pattern:$0x75316420] }
   0x3   :  { %v30_v6 = vunpack.c.0.s8 %v29_v3  ;;  %v27_v10 = vcombine.high %v65_v8, %v65_v8  ;;  %v42_v14 = vld [vmem:[%s110_s2] sm:$0x7] }
   0x4   :  { %v16_v5 = vmul.f32 1.442695, %v15_v1  ;;  %v48_v12 = vsub.s32 0, %v32_v7 }
   0x5   :  { %v33_v9 = vsub.s32 %v30_v6, %v32_v7 }
   0x6   :  { %67 = vpow2.f32 %v16_v5 }
   0x7   :  { %v34_v11 = vrot.slane %v65_v8, %v33_v9  ;;  %v41_v13 = vrot.slane %v27_v10, %v33_v9 }
   0x9   :  { %v49_v16 = vrot.slane %v34_v11, %v48_v12  ;;  %v53_v17 = vrot.slane %v41_v13, %v48_v12 }
  0x13   :  { %v68_v18 = vpop.eup %67 }
  0x14   :  { %v44_v19 = vmul.f32 %v68_v18, %v42_v14  ;;  %v45_v20 = vmul.f32 %v68_v18, %v43_v15 }
  0x16   :  { %v56_v21 = vadd.f32 %v49_v16, %v44_v19  ;;  %v57_v22 = vadd.f32 %v53_v17, %v45_v20 }
  0x18   :  { %59 = vst.msk [vmem:[%s111_s3] sm:$0x7] %vm58_vm0, %v56_v21  ;;  %60 = vst.msk [vmem:[%s111_s3 + $0x4] sm:$0x7] %vm58_vm0, %v57_v22 }

</bundles_post_ra>
